<compile_context>
chip_gen: v5e
topology: v5e:2x2
jax: 0.10.0
libtpu: 0.0.40
codegen_flags: <defaults>
</compile_context>

<pallas_src>
import functools

import jax
import jax.numpy as jnp
from jax import lax
from jax.experimental import pallas as pl
from jax.experimental.pallas import tpu as pltpu


def _vq_kernel(z_ref, et_ref, ekd_ref, e2h_ref, zq_ref, idx_ref):
    """One N-tile of the VQ argmin + codebook gather.

    z_ref   : (TN, Dp) f32   token tile (Dp = D zero-padded to mult. of 128)
    et_ref  : (Dp, K)  bf16  codebook, transposed (K on lanes), resident
    ekd_ref : (K, Dp)  f32   codebook, untransposed, resident (exact gather)
    e2h_ref : (1, K)   f32   0.5 * per-code squared norms, resident
    zq_ref  : (TN, Dp) f32   quantized tokens (output)
    idx_ref : (1, TN)  i32   argmin indices, lane-dense (output)
    """
    z = z_ref[...]                                        # (TN, Dp) f32
    zb = z.astype(jnp.bfloat16)                           # in-kernel cast (VPU)
    et = et_ref[...]                                      # (Dp, K) bf16
    e2h = e2h_ref[...]                                    # (1, K) f32

    # argmin_j ||z_i - e_j||^2 == argmin_j (0.5*||e_j||^2 - <z_i, e_j>)
    # (per-row ||z_i||^2 dropped; constant 2x scale folded out — both are
    #  argmin-invariant).  bf16 MXU matmul, f32 accumulate.
    score = e2h - jnp.dot(zb, et, preferred_element_type=jnp.float32)  # (TN, K)

    idx = jnp.argmin(score, axis=1).astype(jnp.int32)     # first-min tie-break

    # Gather winning rows with one one-hot MXU matmul against the f32 (K, Dp)
    # codebook (exact: exactly one 1.0 per row; no transposed RHS).
    onehot = (lax.broadcasted_iota(jnp.int32, score.shape, 1)
              == idx[:, None]).astype(jnp.float32)        # (TN, K)
    zq_ref[...] = jnp.dot(onehot, ekd_ref[...],
                          preferred_element_type=jnp.float32)          # (TN, Dp)

    # Lane-dense index write (last dim = TN, multiple of 128 -> unmasked vst).
    idx_ref[...] = idx[None, :]                           # (1, TN)


def _vmem_limit_bytes(tn, d_pad, k):
    """Generous scoped-VMEM budget for this kernel, capped under physical."""
    z_io = 2 * (tn * d_pad * 4) * 2          # z in + zq out, double-buffered
    codebook = k * d_pad * 2 + k * d_pad * 4 + k * 4   # bf16 et + f32 e_kd + e2h
    idx_io = 2 * (tn * 4)
    interm = 3 * tn * k * 4                  # (TN, K) score / one-hot spill slack
    est = z_io + codebook + idx_io + interm + (4 << 20)
    try:
        phys = int(pltpu.get_tpu_info().vmem_capacity_bytes)
    except Exception:
        phys = 64 << 20                      # v7x per-TC VMEM (smallest gen)
    return int(min(max(est, 32 << 20), int(phys * 0.9)))


def vq_lookup_pallas(z_flat, embedding, *, tn=512):
    """Nearest-codebook lookup.

    z_flat    : (N, D) f32 tokens (already l2-normalized if use_l2_norm)
    embedding : (K, D) f32 codebook (already l2-normalized if use_l2_norm)
    Returns (z_quantized (N, D) f32, min_encoding_indices (N,) i32).
    """
    n, d = z_flat.shape
    k, d2 = embedding.shape
    assert d == d2

    # Pad D up to a multiple of 128 (full (8,128) vregs / MXU feed); zero
    # padding is argmin- and gather-invariant.  Pad N up to the token tile.
    d_pad = max(128, ((d + 127) // 128) * 128)
    n_min = max(128, ((n + 127) // 128) * 128)
    tn = max(128, min(tn, n_min))
    tn = (tn // 128) * 128
    assert tn % 128 == 0
    n_tiles = pl.cdiv(n, tn)
    n_pad = n_tiles * tn

    if n_pad != n or d_pad != d:
        z_flat = jnp.pad(z_flat, ((0, n_pad - n), (0, d_pad - d)))
    emb_p = embedding.astype(jnp.float32)
    if d_pad != d:
        emb_p = jnp.pad(emb_p, ((0, 0), (0, d_pad - d)))

    et_bf16 = emb_p.T.astype(jnp.bfloat16)                 # (Dp, K), K on lanes
    e_kd = emb_p                                           # (K, Dp), f32 gather
    e2_half = 0.5 * jnp.sum(emb_p * emb_p, axis=1)[None, :]  # (1, K)

    single = pl.Buffered(buffer_count=1)                   # constant blocks: no double-buffer

    zq, idx = pl.pallas_call(
        _vq_kernel,
        out_shape=(
            jax.ShapeDtypeStruct((n_pad, d_pad), jnp.float32),
            jax.ShapeDtypeStruct((1, n_pad), jnp.int32),
        ),
        grid_spec=pltpu.PrefetchScalarGridSpec(
            num_scalar_prefetch=0,
            grid=(n_tiles,),
            in_specs=[
                pl.BlockSpec((tn, d_pad), lambda i: (i, 0)),   # token tile (pipelined)
                pl.BlockSpec((d_pad, k), lambda i: (0, 0),     # bf16 codebook^T, resident
                             pipeline_mode=single),
                pl.BlockSpec((k, d_pad), lambda i: (0, 0),     # f32 codebook, resident
                             pipeline_mode=single),
                pl.BlockSpec((1, k), lambda i: (0, 0),         # 0.5*||e||^2, resident
                             pipeline_mode=single),
            ],
            out_specs=(
                pl.BlockSpec((tn, d_pad), lambda i: (i, 0)),   # quantized tile
                pl.BlockSpec((1, tn), lambda i: (0, i)),       # lane-dense indices
            ),
        ),
        compiler_params=pltpu.CompilerParams(
            dimension_semantics=("parallel",),                 # N-axis megacore sharding
            vmem_limit_bytes=_vmem_limit_bytes(tn, d_pad, k)),
    )(z_flat, et_bf16, e_kd, e2_half)

    return zq[:n, :d], idx[0, :n]


class VectorQuantizerPallas:
    """JAX/Pallas port of titok VectorQuantizer (forward only)."""

    def __init__(self, codebook_size=1024, token_size=256,
                 commitment_cost=0.25, use_l2_norm=False, seed=0,
                 tile_n=512):
        self.codebook_size = codebook_size
        self.token_size = token_size
        self.commitment_cost = commitment_cost
        self.use_l2_norm = use_l2_norm
        self.tile_n = tile_n
        # Deterministic init matching nn.Embedding.weight.uniform_(-1/K, 1/K).
        key = jax.random.PRNGKey(seed)
        self.embedding = jax.random.uniform(
            key, (codebook_size, token_size), dtype=jnp.float32,
            minval=-1.0 / codebook_size, maxval=1.0 / codebook_size)

    @functools.partial(jax.jit, static_argnums=0)
    def __call__(self, z):
        # z: (B, C, H, W) NCHW, C == token_size (same as the PyTorch module).
        z = z.astype(jnp.float32)
        b, c, h, w = z.shape
        assert c == self.token_size

        z_nhwc = jnp.transpose(z, (0, 2, 3, 1))             # b h w c
        z_flat = z_nhwc.reshape(b * h * w, c)               # (N, D)

        if self.use_l2_norm:
            z_flat_k = z_flat / jnp.maximum(
                jnp.linalg.norm(z_flat, axis=-1, keepdims=True), 1e-12)
            emb = self.embedding / jnp.maximum(
                jnp.linalg.norm(self.embedding, axis=-1, keepdims=True), 1e-12)
        else:
            z_flat_k = z_flat
            emb = self.embedding

        z_quantized_flat, min_idx = vq_lookup_pallas(
            z_flat_k, emb, tn=self.tile_n)
        # (rows of `emb` are already l2-normalized when use_l2_norm, so the
        #  gathered entries match normalize(get_codebook_entry(.)))

        z_q = z_quantized_flat.reshape(b, h, w, c)
        z_for_loss = z_nhwc
        if self.use_l2_norm:
            z_for_loss = z_nhwc / jnp.maximum(
                jnp.linalg.norm(z_nhwc, axis=-1, keepdims=True), 1e-12)

        # Forward-pass values of the losses (detach only affects gradients).
        sq_err = jnp.mean((z_q - z_for_loss) ** 2)
        commitment_loss = self.commitment_cost * sq_err
        codebook_loss = sq_err
        loss = commitment_loss + codebook_loss

        # Straight-through estimator: numerically z + (zq - z) == zq.
        z_q_st = z_for_loss + lax.stop_gradient(z_q - z_for_loss)
        z_q_out = jnp.transpose(z_q_st, (0, 3, 1, 2))        # back to NCHW

        result_dict = dict(
            quantizer_loss=loss,
            commitment_loss=commitment_loss,
            codebook_loss=codebook_loss,
            min_encoding_indices=min_idx.reshape(b, h, w),
        )
        return z_q_out, result_dict


if __name__ == "__main__":
    # Small shapes: batch=2, token_size (=C)=32, spatial 8x8, codebook=256.
    codebook_size, token_size = 256, 32
    b, h, w = 2, 8, 8

    key = jax.random.PRNGKey(0)
    z = jax.random.normal(key, (b, token_size, h, w), dtype=jnp.float32)

    for use_l2 in (False, True):
        vq = VectorQuantizerPallas(codebook_size=codebook_size,
                                   token_size=token_size,
                                   commitment_cost=0.25,
                                   use_l2_norm=use_l2,
                                   seed=0)
        z_q, results = vq(z)
        jax.block_until_ready((z_q, results))

        # --- correctness checks against a pure-JAX f32 reference ------------
        z_ref = jnp.transpose(z, (0, 2, 3, 1)).reshape(-1, token_size)
        emb = vq.embedding
        if use_l2:
            z_ref = z_ref / jnp.maximum(
                jnp.linalg.norm(z_ref, axis=-1, keepdims=True), 1e-12)
            emb = emb / jnp.maximum(
                jnp.linalg.norm(emb, axis=-1, keepdims=True), 1e-12)

        d_ref = (jnp.sum(z_ref ** 2, axis=1, keepdims=True)
                 + jnp.sum(emb ** 2, axis=1)
                 - 2.0 * z_ref @ emb.T)                      # exact f32 distances
        d_min = jnp.min(d_ref, axis=1)

        idx_k = results["min_encoding_indices"].reshape(-1)
        d_sel = d_ref[jnp.arange(d_ref.shape[0]), idx_k]

        # The kernel's distance matmul is bf16: near-ties may flip indices.
        # Bound the allowed slack by the actual bf16 input-rounding effect.
        dot_f32 = z_ref @ emb.T
        dot_bf = (z_ref.astype(jnp.bfloat16).astype(jnp.float32)
                  @ emb.astype(jnp.bfloat16).astype(jnp.float32).T)
        err = jnp.max(jnp.abs(dot_f32 - dot_bf), axis=1)     # per-row dot error
        assert bool(jnp.all(d_sel <= d_min + 6.0 * err + 1e-5)), \
            "kernel picked a code that is not (near-)optimal"

        # The quantized output must exactly match a gather of the selected
        # codebook rows (the gather matmul is exact f32 one-hot).
        zq_ref = emb[idx_k].reshape(b, h, w, token_size)
        zq_ref = jnp.transpose(zq_ref, (0, 3, 1, 2))
        assert bool(jnp.allclose(zq_ref, z_q, atol=1e-5))

    print("KERNEL_OK")
</pallas_src>

<mosaic_0001>
module attributes {stable_mosaic.version = 11 : i64} {
  func.func @_vq_kernel(%arg0: i32, %arg1: memref<128x128xf32, #tpu.memory_space<vmem>>, %arg2: memref<128x256xbf16, #tpu.memory_space<vmem>>, %arg3: memref<256x128xf32, #tpu.memory_space<vmem>>, %arg4: memref<1x256xf32, #tpu.memory_space<vmem>>, %arg5: memref<128x128xf32, #tpu.memory_space<vmem>>, %arg6: memref<1x128xi32, #tpu.memory_space<vmem>>) attributes {dimension_semantics = [#tpu.dimension_semantics<parallel>], iteration_bounds = array<i64: 1>, scalar_prefetch = 0 : i64, scratch_operands = 0 : i64, tpu.core_type = #tpu.core_type<tc>, window_params = [{transform_indices = @transform_0, window_bounds = array<i64: 128, 128>}, {pipeline_mode = #tpu.pipeline_mode<synchronous>, transform_indices = @transform_1, window_bounds = array<i64: 128, 256>}, {pipeline_mode = #tpu.pipeline_mode<synchronous>, transform_indices = @transform_2, window_bounds = array<i64: 256, 128>}, {pipeline_mode = #tpu.pipeline_mode<synchronous>, transform_indices = @transform_3, window_bounds = array<i64: 1, 256>}, {transform_indices = @transform_4, window_bounds = array<i64: 128, 128>}, {transform_indices = @transform_5, window_bounds = array<i64: 1, 128>}]} {
    %c0 = arith.constant 0 : index
    %c0_0 = arith.constant 0 : index
    %0 = vector.load %arg1[%c0, %c0_0] : memref<128x128xf32, #tpu.memory_space<vmem>>, vector<128x128xf32>
    %1 = arith.truncf %0 : vector<128x128xf32> to vector<128x128xbf16>
    %c0_1 = arith.constant 0 : index
    %c0_2 = arith.constant 0 : index
    %2 = vector.load %arg2[%c0_1, %c0_2] : memref<128x256xbf16, #tpu.memory_space<vmem>>, vector<128x256xbf16>
    %c0_3 = arith.constant 0 : index
    %c0_4 = arith.constant 0 : index
    %3 = vector.load %arg4[%c0_3, %c0_4] : memref<1x256xf32, #tpu.memory_space<vmem>>, vector<1x256xf32>
    %cst = arith.constant dense<0.000000e+00> : vector<128x256xf32>
    %4 = tpu.matmul %1, %2, %cst {dimension_numbers = #tpu.dot_dimension_numbers<[1], [0], [0], [1], [0, 0, 1, 1], [], []>} : vector<128x128xbf16>, vector<128x256xbf16>, vector<128x256xf32> -> vector<128x256xf32>
    %5 = vector.broadcast %3 : vector<1x256xf32> to vector<128x256xf32>
    %6 = arith.subf %5, %4 : vector<128x256xf32>
    %7 = tpu.reduce_index %6 {axis = 1 : i32, kind = #tpu.reduction_kind<arg_min>} : vector<128x256xf32> -> vector<128xi32>
    %8 = tpu.iota {dimensions = array<i32: 1>} : vector<128x256xi32>
    %9 = vector.shape_cast %7 : vector<128xi32> to vector<128x1xi32>
    %10 = vector.broadcast %9 : vector<128x1xi32> to vector<128x256xi32>
    %11 = arith.cmpi eq, %8, %10 : vector<128x256xi32>
    %12 = arith.extui %11 : vector<128x256xi1> to vector<128x256xi32>
    %13 = arith.sitofp %12 : vector<128x256xi32> to vector<128x256xf32>
    %c0_5 = arith.constant 0 : index
    %c0_6 = arith.constant 0 : index
    %14 = vector.load %arg3[%c0_5, %c0_6] : memref<256x128xf32, #tpu.memory_space<vmem>>, vector<256x128xf32>
    %cst_7 = arith.constant dense<0.000000e+00> : vector<128x128xf32>
    %15 = tpu.matmul %13, %14, %cst_7 {dimension_numbers = #tpu.dot_dimension_numbers<[1], [0], [0], [1], [0, 0, 1, 1], [], []>} : vector<128x256xf32>, vector<256x128xf32>, vector<128x128xf32> -> vector<128x128xf32>
    %c0_8 = arith.constant 0 : index
    %c0_9 = arith.constant 0 : index
    %16 = vector.load %arg5[%c0_8, %c0_9] : memref<128x128xf32, #tpu.memory_space<vmem>>, vector<128x128xf32>
    tpu.vector_store %arg5[%c0_8, %c0_9], %15 {strides = array<i32>} : memref<128x128xf32, #tpu.memory_space<vmem>>, vector<128x128xf32>,
    %17 = vector.shape_cast %7 : vector<128xi32> to vector<1x128xi32>
    %c0_10 = arith.constant 0 : index
    %c0_11 = arith.constant 0 : index
    %18 = vector.load %arg6[%c0_10, %c0_11] : memref<1x128xi32, #tpu.memory_space<vmem>>, vector<1x128xi32>
    tpu.vector_store %arg6[%c0_10, %c0_11], %17 {strides = array<i32>} : memref<1x128xi32, #tpu.memory_space<vmem>>, vector<1x128xi32>,
    return
  }
  func.func @transform_0(%arg0: i32) -> (i32, i32) {
    %c0_i32 = arith.constant 0 : i32
    %c0_i32_0 = arith.constant 0 : i32
    return %arg0, %c0_i32 : i32, i32
  }
  func.func @transform_1(%arg0: i32) -> (i32, i32) {
    %c0_i32 = arith.constant 0 : i32
    %c0_i32_0 = arith.constant 0 : i32
    %c0_i32_1 = arith.constant 0 : i32
    return %c0_i32, %c0_i32_0 : i32, i32
  }
  func.func @transform_2(%arg0: i32) -> (i32, i32) {
    %c0_i32 = arith.constant 0 : i32
    %c0_i32_0 = arith.constant 0 : i32
    %c0_i32_1 = arith.constant 0 : i32
    return %c0_i32, %c0_i32_0 : i32, i32
  }
  func.func @transform_3(%arg0: i32) -> (i32, i32) {
    %c0_i32 = arith.constant 0 : i32
    %c0_i32_0 = arith.constant 0 : i32
    %c0_i32_1 = arith.constant 0 : i32
    return %c0_i32, %c0_i32_0 : i32, i32
  }
  func.func @transform_4(%arg0: i32) -> (i32, i32) {
    %c0_i32 = arith.constant 0 : i32
    %c0_i32_0 = arith.constant 0 : i32
    return %arg0, %c0_i32 : i32, i32
  }
  func.func @transform_5(%arg0: i32) -> (i32, i32) {
    %c0_i32 = arith.constant 0 : i32
    %c0_i32_0 = arith.constant 0 : i32
    return %c0_i32, %arg0 : i32, i32
  }
}

</mosaic_0001>

<bundles_post_ra>
// kernel: squeeze.1
= control target key start
LH: loop header
LB: loop body
LE: loop exit
PB: predicated region body
PF: predicated region fallthrough
CT: control target
= control target key end

     0   :  { %s202_s0 = inlined_call_operand.vmem [shape: s32[128], index: 0, kind: input, shape index: {}]   ;;  %s203_s1 = inlined_call_operand.hbm [shape: s32[2,8,8], index: 1, kind: output, shape index: {}]  }
   0x1   :  { %v5_v0 = vld [vmem:[%s202_s0] sm:$0x1] }
   0x2   :  { %2 = vsyncpa [#allocation1], 0  ;;  %6 = vst [vmem:[#allocation2] sm:$0x1] %v5_v0  ;;  %s154_s0 = smov 104   ;;  %s155_s8 = smov 120  }
   0x3   :  { %s156_s9 = smov 88   ;;  %s157_s10 = smov 96   ;;  %vm8_vm0 = vcmask 64512  }
   0x4   :  { %s158_s11 = smov 112   ;;  %s159_s12 = smov 80  }
   0x5   :  { %s160_s13 = smov 64   ;;  %s161_s14 = smov 72  }
   0x6   :  { %s162_s15 = smov 56   ;;  %s163_s16 = smov 40  }
   0x7   :  { %s164_s17 = smov 48   ;;  %s165_s18 = smov 32  }
   0x8   :  { %s166_s19 = smov 16   ;;  %s167_s20 = smov 24  }
   0x9   :  { %v22_v1 = vld [vmem:[#allocation2] sm:$0x1]   ;;  %s168_s21 = smov 8   ;;  %s169_s22 = smov [#allocation0]  }
   0xa   :  { %v10_v2 = vld [vmem:[#allocation2] sm:$0x1]   ;;  %23 = vrot.lane.b32.xlu1 %v22_v1, %s154_s0  ;;  %s103_s23 = sshll.u32 %s169_s22, 4  ;;  %s105_s1 = sshll.u32 %s203_s1, 4  ;;  %s104_s23 = int_to_ptr.vmem [resolvable:$true] %s103_s23  ;;  %s106_s1 = int_to_ptr.hbm [resolvable:$true] %s105_s1 }
   0xb   :  { %11 = vrot.lane.b32.xlu0 %v10_v2, %s155_s8  ;;  %v34_v3 = vld [vmem:[#allocation2] sm:$0x1]  }
   0xc   :  { %35 = vrot.lane.b32.xlu2 %v34_v3, %s156_s9  ;;  %v28_v4 = vld [vmem:[#allocation2] sm:$0x1]  }
   0xd   :  { %v16_v5 = vld [vmem:[#allocation2] sm:$0x1]  }
   0xe   :  { %v40_v6 = vld [vmem:[#allocation2] sm:$0x1]  }
   0xf   :  { %v52_v7 = vld [vmem:[#allocation2] sm:$0x1]  }
  0x10   :  { %v46_v8 = vld [vmem:[#allocation2] sm:$0x1]  }
  0x11   :  { %v58_v9 = vld [vmem:[#allocation2] sm:$0x1]  }
  0x12   :  { %29 = vrot.lane.b32.xlu1 %v28_v4, %s157_s10  ;;  %v70_v10 = vld [vmem:[#allocation2] sm:$0x1]  }
  0x13   :  { %17 = vrot.lane.b32.xlu0 %v16_v5, %s158_s11  ;;  %v64_v11 = vld [vmem:[#allocation2] sm:$0x1]  }
  0x14   :  { %41 = vrot.lane.b32.xlu2 %v40_v6, %s159_s12  ;;  %v76_v12 = vld [vmem:[#allocation2] sm:$0x1]  }
  0x15   :  { %v88_v13 = vld [vmem:[#allocation2] sm:$0x1]  }
  0x16   :  { %v82_v14 = vld [vmem:[#allocation2] sm:$0x1]  }
  0x17   :  { %v94_v15 = vld [vmem:[#allocation2] sm:$0x1]  }
  0x18   :  { %v7_v21 = vld [vmem:[#allocation2] sm:$0x1]  }
  0x19   :  { %9 = vst.msk [vmem:[#allocation0] sm:$0x1] %vm8_vm0, %v7_v21  }
  0x1a   :  { %53 = vrot.lane.b32.xlu1 %v52_v7, %s160_s13 }
  0x1b   :  { %47 = vrot.lane.b32.xlu0 %v46_v8, %s161_s14 }
  0x1c   :  { %59 = vrot.lane.b32.xlu2 %v58_v9, %s162_s15 }
  0x22   :  { %71 = vrot.lane.b32.xlu1 %v70_v10, %s163_s16 }
  0x23   :  { %65 = vrot.lane.b32.xlu0 %v64_v11, %s164_s17 }
  0x24   :  { %77 = vrot.lane.b32.xlu2 %v76_v12, %s165_s18 }
  0x2a   :  { %89 = vrot.lane.b32.xlu1 %v88_v13, %s166_s19 }
  0x2b   :  { %83 = vrot.lane.b32.xlu0 %v82_v14, %s167_s20 }
  0x2c   :  { %95 = vrot.lane.b32.xlu2 %v94_v15, %s168_s21 }
  0x66   :  { %v36_v16 = vpop.permute.xlu2 %35  }
  0x67   :  { %39 = vst.msk [vmem:[#allocation0 + $0x5] sm:$0x1] %vm8_vm0, %v36_v16  }
  0x6e   :  { %v42_v17 = vpop.permute.xlu2 %41  }
  0x6f   :  { %45 = vst.msk [vmem:[#allocation0 + $0x6] sm:$0x1] %vm8_vm0, %v42_v17  }
  0x76   :  { %v60_v18 = vpop.permute.xlu2 %59  }
  0x77   :  { %63 = vst.msk [vmem:[#allocation0 + $0x9] sm:$0x1] %vm8_vm0, %v60_v18  }
  0x7c   :  { %v24_v19 = vpop.permute.xlu1 %23  }
  0x7d   :  { %v12_v20 = vpop.permute.xlu0 %11   ;;  %27 = vst.msk [vmem:[#allocation0 + $0x3] sm:$0x1] %vm8_vm0, %v24_v19  }
  0x7e   :  { %15 = vst.msk [vmem:[#allocation0 + $0x1] sm:$0x1] %vm8_vm0, %v12_v20   ;;  %v78_v22 = vpop.permute.xlu2 %77  }
  0x7f   :  { %81 = vst.msk [vmem:[#allocation0 + $0xc] sm:$0x1] %vm8_vm0, %v78_v22  }
  0x84   :  { %v30_v23 = vpop.permute.xlu1 %29  }
  0x85   :  { %v18_v24 = vpop.permute.xlu0 %17   ;;  %33 = vst.msk [vmem:[#allocation0 + $0x4] sm:$0x1] %vm8_vm0, %v30_v23  }
  0x86   :  { %21 = vst.msk [vmem:[#allocation0 + $0x2] sm:$0x1] %vm8_vm0, %v18_v24   ;;  %v96_v25 = vpop.permute.xlu2 %95  }
  0x87   :  { %99 = vst.msk [vmem:[#allocation0 + $0xf] sm:$0x1] %vm8_vm0, %v96_v25  }
  0x8c   :  { %v54_v26 = vpop.permute.xlu1 %53  }
  0x8d   :  { %v48_v27 = vpop.permute.xlu0 %47   ;;  %57 = vst.msk [vmem:[#allocation0 + $0x8] sm:$0x1] %vm8_vm0, %v54_v26  }
  0x8e   :  { %51 = vst.msk [vmem:[#allocation0 + $0x7] sm:$0x1] %vm8_vm0, %v48_v27  }
  0x94   :  { %v72_v28 = vpop.permute.xlu1 %71  }
  0x95   :  { %v66_v29 = vpop.permute.xlu0 %65   ;;  %75 = vst.msk [vmem:[#allocation0 + $0xb] sm:$0x1] %vm8_vm0, %v72_v28  }
  0x96   :  { %69 = vst.msk [vmem:[#allocation0 + $0xa] sm:$0x1] %vm8_vm0, %v66_v29  }
  0x9c   :  { %v90_v30 = vpop.permute.xlu1 %89  }
  0x9d   :  { %v84_v31 = vpop.permute.xlu0 %83   ;;  %93 = vst.msk [vmem:[#allocation0 + $0xe] sm:$0x1] %vm8_vm0, %v90_v30  }
  0x9e   :  { %87 = vst.msk [vmem:[#allocation0 + $0xd] sm:$0x1] %vm8_vm0, %v84_v31  }
  0x9f   :  { %108 = dma.vmem_to_hbm [thread:$0]  %s104_s23, 256, %s106_s1, [#allocation1]  }
  0xa0   :  { %152 = dma.done.wait [#allocation1], 256  }
  0xa1   :  { %153 = vsyncadd [#allocation1], 4294967040 }
  0xa2   :  { %111 = vsyncpa [#allocation1], 1 }

// kernel: a_call__.1
= control target key start
LH: loop header
LB: loop body
LE: loop exit
PB: predicated region body
PF: predicated region fallthrough
CT: control target
= control target key end

     0   :  { %11 = vsyncpa [#allocation3], 0  ;;  %s958_s21 = smov [#allocation2]   ;;  %s959_s23 = smov 128   ;;  %s1574_s0 = inlined_call_operand.vmem [shape: f32[128,128], index: 0, kind: input, shape index: {}]   ;;  %s1575_s1 = inlined_call_operand.vmem [shape: bf16[128,256], index: 1, kind: input, shape index: {}]   ;;  %s1576_s2 = inlined_call_operand.hbm [shape: f32[256,128], index: 2, kind: input, shape index: {}]   ;;  %s1577_s3 = inlined_call_operand.vmem [shape: f32[1,256], index: 3, kind: input, shape index: {}]   ;;  %s1578_s4 = inlined_call_operand.vmem [shape: f32[128,128], index: 4, kind: output, shape index: {0}]   ;;  %s1579_s5 = inlined_call_operand.vmem [shape: s32[1,128], index: 5, kind: output, shape index: {1}]  }
   0x1   :  { %s20_s20 = sshll.u32 %s1576_s2, 4  ;;  %s22_s22 = sshll.u32 %s958_s21, 4  ;;  %s21_s20 = int_to_ptr.hbm [resolvable:$true] %s20_s20  ;;  %s23_s22 = int_to_ptr.vmem [resolvable:$true] %s22_s22 }
   0x2   :  { %s960_s24 = smov 8  }
   0x3   :  { %28 = dma.hbm_to_vmem [thread:$0]  %s21_s20, 4096, %s23_s22, [#allocation3], %s959_s23, %s959_s23, %s960_s24  }
   0x4   :  { %956 = dma.done.wait [#allocation3], 4096  }
   0x5   :  { %957 = vsyncadd [#allocation3], 4294963200  ;;  %v825_v0 = vld [vmem:[%s1575_s1 + $0x70] sm:$0xf]  ;;  %v910_v1 = vld [vmem:[%s1575_s1 + $0x74] sm:$0xf0] }
   0x6   :  { %v909_v2 = vld [vmem:[%s1575_s1 + $0x74] sm:$0xf]  ;;  %v826_v3 = vor.u32 %v910_v1, %v825_v0  ;;  %v827_v4 = vld [vmem:[%s1575_s1 + $0x78] sm:$0xf0]  ;;  %v817_v5 = vld [vmem:[%s1575_s1 + $0x60] sm:$0xf] }
   0x7   :  { %v908_v6 = vld [vmem:[%s1575_s1 + $0x64] sm:$0xf0]  ;;  %v830_v7 = vor.u32 %v909_v2, %v827_v4  ;;  %v907_v8 = vld [vmem:[%s1575_s1 + $0x64] sm:$0xf]  ;;  %v819_v9 = vld [vmem:[%s1575_s1 + $0x68] sm:$0xf0] }
   0x8   :  { %156 = vmatpush.bf16.msra.mxu0 %v826_v3  ;;  %v818_v10 = vor.u32 %v908_v6, %v817_v5  ;;  %v822_v11 = vor.u32 %v907_v8, %v819_v9  ;;  %v809_v12 = vld [vmem:[%s1575_s1 + $0x50] sm:$0xf]  ;;  %v906_v13 = vld [vmem:[%s1575_s1 + $0x54] sm:$0xf0]  ;;  %v905_v14 = vld [vmem:[%s1575_s1 + $0x54] sm:$0xf] }
   0x9   :  { %205 = vmatpush.bf16.msra.mxu1 %v830_v7  ;;  %v811_v15 = vld [vmem:[%s1575_s1 + $0x58] sm:$0xf0]  ;;  %v810_v16 = vor.u32 %v906_v13, %v809_v12  ;;  %v801_v18 = vld [vmem:[%s1575_s1 + $0x40] sm:$0xf]  ;;  %v904_v19 = vld [vmem:[%s1575_s1 + $0x44] sm:$0xf0] }
   0xa   :  { %v814_v17 = vor.u32 %v905_v14, %v811_v15  ;;  %v903_v20 = vld [vmem:[%s1575_s1 + $0x44] sm:$0xf]  ;;  %v803_v21 = vld [vmem:[%s1575_s1 + $0x48] sm:$0xf0]  ;;  %v802_v22 = vor.u32 %v904_v19, %v801_v18  ;;  %v793_v24 = vld [vmem:[%s1575_s1 + $0x30] sm:$0xf] }
   0xb   :  { %v806_v23 = vor.u32 %v903_v20, %v803_v21  ;;  %v902_v25 = vld [vmem:[%s1575_s1 + $0x34] sm:$0xf0]  ;;  %v901_v26 = vld [vmem:[%s1575_s1 + $0x34] sm:$0xf]  ;;  %v795_v27 = vld [vmem:[%s1575_s1 + $0x38] sm:$0xf0] }
   0xc   :  { %157 = vmatpush.bf16.msra.mxu0 %v818_v10  ;;  %v794_v28 = vor.u32 %v902_v25, %v793_v24  ;;  %v798_v29 = vor.u32 %v901_v26, %v795_v27  ;;  %v785_v30 = vld [vmem:[%s1575_s1 + $0x20] sm:$0xf]  ;;  %v900_v31 = vld [vmem:[%s1575_s1 + $0x24] sm:$0xf0]  ;;  %v899_v32 = vld [vmem:[%s1575_s1 + $0x24] sm:$0xf] }
   0xd   :  { %206 = vmatpush.bf16.msra.mxu1 %v822_v11  ;;  %v787_v33 = vld [vmem:[%s1575_s1 + $0x28] sm:$0xf0]  ;;  %v786_v34 = vor.u32 %v900_v31, %v785_v30  ;;  %v777_v36 = vld [vmem:[%s1575_s1 + $0x10] sm:$0xf]  ;;  %v898_v37 = vld [vmem:[%s1575_s1 + $0x14] sm:$0xf0] }
   0xe   :  { %v790_v35 = vor.u32 %v899_v32, %v787_v33  ;;  %v897_v38 = vld [vmem:[%s1575_s1 + $0x14] sm:$0xf]  ;;  %v779_v39 = vld [vmem:[%s1575_s1 + $0x18] sm:$0xf0]  ;;  %v778_v40 = vor.u32 %v898_v37, %v777_v36  ;;  %v769_v42 = vld [vmem:[%s1575_s1] sm:$0xf] }
   0xf   :  { %v782_v41 = vor.u32 %v897_v38, %v779_v39  ;;  %v896_v43 = vld [vmem:[%s1575_s1 + $0x4] sm:$0xf0]  ;;  %v895_v44 = vld [vmem:[%s1575_s1 + $0x4] sm:$0xf]  ;;  %v771_v45 = vld [vmem:[%s1575_s1 + $0x8] sm:$0xf0] }
  0x10   :  { %158 = vmatpush.bf16.msra.mxu0 %v810_v16  ;;  %v770_v46 = vor.u32 %v896_v43, %v769_v42  ;;  %v35_v47 = vld [vmem:[%s1574_s0] sm:$0xff]  ;;  %v36_v48 = vld [vmem:[%s1574_s0 + $0x8] sm:$0xff]  ;;  %v774_v49 = vor.u32 %v895_v44, %v771_v45  ;;  %v37_v51 = vld [vmem:[%s1574_s0 + $0x10] sm:$0xff] }
  0x11   :  { %207 = vmatpush.bf16.msra.mxu1 %v814_v17  ;;  %v51_v50 = vpack.c.bf16 %v36_v48, %v35_v47  ;;  %v38_v52 = vld [vmem:[%s1574_s0 + $0x18] sm:$0xff]  ;;  %v39_v54 = vld [vmem:[%s1574_s0 + $0x20] sm:$0xff]  ;;  %v40_v55 = vld [vmem:[%s1574_s0 + $0x28] sm:$0xff] }
  0x12   :  { %v52_v53 = vpack.c.bf16 %v38_v52, %v37_v51  ;;  %v53_v56 = vpack.c.bf16 %v40_v55, %v39_v54  ;;  %v41_v57 = vld [vmem:[%s1574_s0 + $0x30] sm:$0xff]  ;;  %v42_v58 = vld [vmem:[%s1574_s0 + $0x38] sm:$0xff]  ;;  %v43_v60 = vld [vmem:[%s1574_s0 + $0x40] sm:$0xff]  ;;  %v291_v51 = vlaneseq }
  0x13   :  { %v54_v59 = vpack.c.bf16 %v42_v58, %v41_v57  ;;  %v44_v61 = vld [vmem:[%s1574_s0 + $0x48] sm:$0xff]  ;;  %v75_v63 = vld [vmem:[%s1577_s3] sm:$0x3]  ;;  %v45_v2 = vld [vmem:[%s1574_s0 + $0x50] sm:$0xff] }
  0x14   :  { %159 = vmatpush.bf16.msra.mxu0 %v802_v22  ;;  %v55_v62 = vpack.c.bf16 %v44_v61, %v43_v60  ;;  %v1124_v0 = vperm.slane %v75_v63, 0  ;;  %v1126_v1 = vperm.slane %v75_v63, 1  ;;  %v46_v3 = vld [vmem:[%s1574_s0 + $0x58] sm:$0xff]  ;;  %v47_v14 = vld [vmem:[%s1574_s0 + $0x60] sm:$0xff]  ;;  %v48_v15 = vld [vmem:[%s1574_s0 + $0x68] sm:$0xff] }
  0x15   :  { %208 = vmatpush.bf16.msra.mxu1 %v806_v23  ;;  %v56_v4 = vpack.c.bf16 %v46_v3, %v45_v2  ;;  %v57_v17 = vpack.c.bf16 %v48_v15, %v47_v14  ;;  %v49_v48 = vld [vmem:[%s1574_s0 + $0x70] sm:$0xff] }
  0x18   :  { %160 = vmatpush.bf16.msra.mxu0 %v794_v28 }
  0x19   :  { %209 = vmatpush.bf16.msra.mxu1 %v798_v29 }
  0x1c   :  { %161 = vmatpush.bf16.msra.mxu0 %v786_v34 }
  0x1d   :  { %210 = vmatpush.bf16.msra.mxu1 %v790_v35 }
  0x20   :  { %162 = vmatpush.bf16.msra.mxu0 %v778_v40 }
  0x21   :  { %211 = vmatpush.bf16.msra.mxu1 %v782_v41 }
  0x24   :  { %163 = vmatpush.bf16.msra.mxu0 %v770_v46 }
  0x25   :  { %212 = vmatpush.bf16.msra.mxu1 %v774_v49  ;;  %v50_v49 = vld [vmem:[%s1574_s0 + $0x78] sm:$0xff] }
  0x27   :  { %164 = vmatmul.bf16.vlgmr.msra.gmra.mxu0 %v51_v50 }
  0x28   :  { %213 = vmatmul.bf16.vlgmr.msra.gmra.mxu1 %v51_v50  ;;  %v58_v50 = vpack.c.bf16 %v50_v49, %v49_v48  ;;  %v546_v48 = vld [vmem:[#allocation2 + $0xe0] sm:$0xff]  ;;  %v529_v49 = vld [vmem:[#allocation2 + $0x58] sm:$0xff] }
  0x37   :  { %169 = vmatmul.bf16.gmra.mxu0 %v52_v53 }
  0x38   :  { %218 = vmatmul.bf16.gmra.mxu1 %v52_v53  ;;  %v1250_v53 = vand.u32 127, %v291_v51  ;;  %v528_v51 = vld [vmem:[#allocation2 + $0x50] sm:$0xff] }
  0x3a   :  { %v1253_v55 = vadd.s32 128, %v1250_v53 }
  0x47   :  { %174 = vmatmul.bf16.gmra.mxu0 %v53_v56 }
  0x48   :  { %223 = vmatmul.bf16.gmra.mxu1 %v53_v56 }
  0x57   :  { %179 = vmatmul.bf16.gmra.mxu0 %v54_v59 }
  0x58   :  { %228 = vmatmul.bf16.gmra.mxu1 %v54_v59 }
  0x67   :  { %184 = vmatmul.bf16.gmra.mxu0 %v55_v62 }
  0x68   :  { %233 = vmatmul.bf16.gmra.mxu1 %v55_v62 }
  0x77   :  { %189 = vmatmul.bf16.gmra.mxu0 %v56_v4 }
  0x78   :  { %238 = vmatmul.bf16.gmra.mxu1 %v56_v4 }
  0x87   :  { %194 = vmatmul.bf16.gmra.mxu0 %v57_v17 }
  0x88   :  { %243 = vmatmul.bf16.gmra.mxu1 %v57_v17 }
  0x97   :  { %199 = vmatmul.bf16.gmra.mxu0 %v58_v50 }
  0x98   :  { %248 = vmatmul.bf16.gmra.mxu1 %v58_v50  ;;  %v545_v50 = vld [vmem:[#allocation2 + $0xd8] sm:$0xff] }
  0xa4   :  { %v165_v5 = vpop.f32.mrf.mxu0 }
  0xa5   :  { %v1135_v6 = vsub.f32 %v1124_v0, %v165_v5  ;;  %v214_v7 = vpop.f32.mrf.mxu1 }
  0xa6   :  { %v1138_v8 = vsub.f32 %v1126_v1, %v214_v7 }
  0xa8   :  { %vm294_vm0 = vcmp.le.f32.partialorder %v1135_v6, %v1138_v8 }
  0xa9   :  { %v295_v9 = vsel %vm294_vm0, %v1135_v6, %v1138_v8  ;;  %v296_v58 = vsel %vm294_vm0, %v1250_v53, %v1253_v55 }
  0xaa   :  { %297 = vmin.index.xlane.f32.xlu0 %v295_v9 }
  0xac   :  { %v167_v10 = vpop.f32.mrf.mxu0 }
  0xad   :  { %v1148_v11 = vsub.f32 %v1124_v0, %v167_v10  ;;  %v216_v12 = vpop.f32.mrf.mxu1 }
  0xae   :  { %v1151_v13 = vsub.f32 %v1126_v1, %v216_v12 }
  0xb0   :  { %vm302_vm1 = vcmp.le.f32.partialorder %v1148_v11, %v1151_v13 }
  0xb1   :  { %v303_v16 = vsel %vm302_vm1, %v1148_v11, %v1151_v13  ;;  %v304_v62 = vsel %vm302_vm1, %v1250_v53, %v1253_v55  ;;  %vm699_vm1 = vcmask 130112  }
  0xb2   :  { %305 = vmin.index.xlane.f32.xlu1 %v303_v16 }
  0xb4   :  { %v170_v18 = vpop.f32.mrf.mxu0 }
  0xb5   :  { %v1167_v19 = vsub.f32 %v1124_v0, %v170_v18  ;;  %v219_v20 = vpop.f32.mrf.mxu1 }
  0xb6   :  { %v1170_v21 = vsub.f32 %v1126_v1, %v219_v20 }
  0xb8   :  { %vm310_vm2 = vcmp.le.f32.partialorder %v1167_v19, %v1170_v21 }
  0xb9   :  { %v311_v22 = vsel %vm310_vm2, %v1167_v19, %v1170_v21  ;;  %v312_v3 = vsel %vm310_vm2, %v1250_v53, %v1253_v55 }
  0xba   :  { %313 = vmin.index.xlane.f32.xlu2 %v311_v22 }
  0xbc   :  { %v172_v23 = vpop.f32.mrf.mxu0 }
  0xbd   :  { %v1180_v24 = vsub.f32 %v1124_v0, %v172_v23  ;;  %v221_v25 = vpop.f32.mrf.mxu1 }
  0xbe   :  { %v1183_v26 = vsub.f32 %v1126_v1, %v221_v25 }
  0xc0   :  { %vm318_vm3 = vcmp.le.f32.partialorder %v1180_v24, %v1183_v26 }
  0xc1   :  { %v319_v27 = vsel %vm318_vm3, %v1180_v24, %v1183_v26 }
  0xc2   :  { %321 = vmin.index.xlane.f32.xlu2 %v319_v27 }
  0xc4   :  { %v175_v28 = vpop.f32.mrf.mxu0 }
  0xc5   :  { %v1193_v29 = vsub.f32 %v1124_v0, %v175_v28  ;;  %v224_v30 = vpop.f32.mrf.mxu1 }
  0xc6   :  { %v1196_v31 = vsub.f32 %v1126_v1, %v224_v30 }
  0xc8   :  { %vm326_vm4 = vcmp.le.f32.partialorder %v1193_v29, %v1196_v31 }
  0xc9   :  { %v327_v32 = vsel %vm326_vm4, %v1193_v29, %v1196_v31  ;;  %v320_v29 = vsel %vm318_vm3, %v1250_v53, %v1253_v55  ;;  %v518_v31 = vld [vmem:[#allocation2] sm:$0xff] }
  0xca   :  { %329 = vmin.index.xlane.f32.xlu1 %v327_v32  ;;  %v533_v32 = vld [vmem:[#allocation2 + $0x78] sm:$0xff] }
  0xcb   :  { %550 = vmatpush.msra.mxu2 %v533_v32 }
  0xcc   :  { %v177_v33 = vpop.f32.mrf.mxu0 }
  0xcd   :  { %v1206_v34 = vsub.f32 %v1124_v0, %v177_v33  ;;  %v226_v35 = vpop.f32.mrf.mxu1  ;;  %v549_v33 = vld [vmem:[#allocation2 + $0xf8] sm:$0xff] }
  0xce   :  { %v1209_v36 = vsub.f32 %v1126_v1, %v226_v35  ;;  %615 = vmatpush.msra.mxu3 %v549_v33 }
  0xd0   :  { %vm334_vm5 = vcmp.le.f32.partialorder %v1206_v34, %v1209_v36 }
  0xd1   :  { %v335_v37 = vsel %vm334_vm5, %v1206_v34, %v1209_v36 }
  0xd2   :  { %337 = vmin.index.xlane.f32.xlu0 %v335_v37  ;;  %v532_v37 = vld [vmem:[#allocation2 + $0x70] sm:$0xff] }
  0xd3   :  { %551 = vmatpush.msra.mxu2 %v532_v37 }
  0xd4   :  { %v180_v38 = vpop.f32.mrf.mxu0 }
  0xd5   :  { %v229_v39 = vpop.f32.mrf.mxu1  ;;  %v1219_v40 = vsub.f32 %v1124_v0, %v180_v38  ;;  %v548_v38 = vld [vmem:[#allocation2 + $0xf0] sm:$0xff] }
  0xd6   :  { %v1222_v41 = vsub.f32 %v1126_v1, %v229_v39  ;;  %v531_v39 = vld [vmem:[#allocation2 + $0x68] sm:$0xff]  ;;  %616 = vmatpush.msra.mxu3 %v548_v38 }
  0xd7   :  { %552 = vmatpush.msra.mxu2 %v531_v39 }
  0xd8   :  { %vm342_vm6 = vcmp.le.f32.partialorder %v1219_v40, %v1222_v41 }
  0xd9   :  { %v343_v42 = vsel %vm342_vm6, %v1219_v40, %v1222_v41  ;;  %v344_v33 = vsel %vm342_vm6, %v1250_v53, %v1253_v55 }
  0xda   :  { %345 = vmin.index.xlane.f32.xlu1 %v343_v42 }
  0xdc   :  { %v182_v43 = vpop.f32.mrf.mxu0 }
  0xdd   :  { %v1232_v44 = vsub.f32 %v1124_v0, %v182_v43  ;;  %v231_v45 = vpop.f32.mrf.mxu1 }
  0xde   :  { %v1235_v46 = vsub.f32 %v1126_v1, %v231_v45  ;;  %v547_v45 = vld [vmem:[#allocation2 + $0xe8] sm:$0xff] }
  0xdf   :  { %617 = vmatpush.msra.mxu3 %v547_v45 }
  0xe0   :  { %vm350_vm7 = vcmp.le.f32.partialorder %v1232_v44, %v1235_v46 }
  0xe1   :  { %v351_v47 = vsel %vm350_vm7, %v1232_v44, %v1235_v46  ;;  %618 = vmatpush.msra.mxu3 %v546_v48  ;;  %v352_v34 = vsel %vm350_vm7, %v1250_v53, %v1253_v55  ;;  %v961_v46 = vmov 1.0   ;;  %vm703_vm7 = vcmask 195712  }
  0xe2   :  { %353 = vmin.index.xlane.f32.xlu1 %v351_v47  ;;  %v530_v47 = vld [vmem:[#allocation2 + $0x60] sm:$0xff] }
  0xe3   :  { %553 = vmatpush.msra.mxu2 %v530_v47  ;;  %619 = vmatpush.msra.mxu3 %v545_v50 }
  0xe4   :  { %v185_v54 = vpop.f32.mrf.mxu0 }
  0xe5   :  { %v234_v56 = vpop.f32.mrf.mxu1  ;;  %v1300_v20 = vsub.f32 %v1124_v0, %v185_v54  ;;  %554 = vmatpush.msra.mxu2 %v529_v49  ;;  %v527_v54 = vld [vmem:[#allocation2 + $0x48] sm:$0xff] }
  0xe6   :  { %v1303_v21 = vsub.f32 %v1126_v1, %v234_v56  ;;  %v543_v56 = vld [vmem:[#allocation2 + $0xc8] sm:$0xff] }
  0xe7   :  { %555 = vmatpush.msra.mxu2 %v528_v51 }
  0xe8   :  { %vm358_vm11 = vcmp.le.f32.partialorder %v1300_v20, %v1303_v21 }
  0xe9   :  { %v359_v35 = vsel %vm358_vm11, %v1300_v20, %v1303_v21  ;;  %556 = vmatpush.msra.mxu2 %v527_v54  ;;  %v360_v54 = vsel %vm358_vm11, %v1250_v53, %v1253_v55  ;;  %v705_v20 = vadd.s32 4294967272, %v1250_v53  ;;  %v709_v21 = vadd.s32 4294967264, %v1250_v53 }
  0xec   :  { %v187_v59 = vpop.f32.mrf.mxu0 }
  0xed   :  { %v236_v60 = vpop.f32.mrf.mxu1  ;;  %v1284_v14 = vsub.f32 %v1124_v0, %v187_v59  ;;  %v525_v59 = vld [vmem:[#allocation2 + $0x38] sm:$0xff] }
  0xee   :  { %v1287_v15 = vsub.f32 %v1126_v1, %v236_v60  ;;  %v541_v60 = vld [vmem:[#allocation2 + $0xb8] sm:$0xff] }
  0xf0   :  { %vm366_vm9 = vcmp.le.f32.partialorder %v1284_v14, %v1287_v15 }
  0xf1   :  { %v367_v22 = vsel %vm366_vm9, %v1284_v14, %v1287_v15  ;;  %v368_v51 = vsel %vm366_vm9, %v1250_v53, %v1253_v55  ;;  %v701_v15 = vadd.s32 4294967280, %v1250_v53  ;;  %vm711_vm9 = vcmask 326912  }
  0xf4   :  { %v190_v63 = vpop.f32.mrf.mxu0 }
  0xf5   :  { %v239_v4 = vpop.f32.mrf.mxu1  ;;  %v1271_v9 = vsub.f32 %v1124_v0, %v190_v63  ;;  %v523_v63 = vld [vmem:[#allocation2 + $0x28] sm:$0xff] }
  0xf6   :  { %v1274_v10 = vsub.f32 %v1126_v1, %v239_v4  ;;  %v522_v4 = vld [vmem:[#allocation2 + $0x20] sm:$0xff] }
  0xf8   :  { %vm374_vm8 = vcmp.le.f32.partialorder %v1271_v9, %v1274_v10 }
  0xf9   :  { %v375_v13 = vsel %vm374_vm8, %v1271_v9, %v1274_v10 }
  0xfc   :  { %v192_v5 = vpop.f32.mrf.mxu0 }
  0xfd   :  { %v241_v6 = vpop.f32.mrf.mxu1  ;;  %v1290_v16 = vsub.f32 %v1124_v0, %v192_v5  ;;  %v538_v5 = vld [vmem:[#allocation2 + $0xa0] sm:$0xff] }
  0xfe   :  { %v1293_v17 = vsub.f32 %v1126_v1, %v241_v6  ;;  %v521_v6 = vld [vmem:[#allocation2 + $0x18] sm:$0xff] }
 0x100   :  { %vm382_vm10 = vcmp.le.f32.partialorder %v1290_v16, %v1293_v17 }
 0x101   :  { %v383_v23 = vsel %vm382_vm10, %v1290_v16, %v1293_v17  ;;  %v384_v14 = vsel %vm382_vm10, %v1250_v53, %v1253_v55 }
 0x104   :  { %v195_v11 = vpop.f32.mrf.mxu0 }
 0x105   :  { %v244_v12 = vpop.f32.mrf.mxu1  ;;  %v1316_v25 = vsub.f32 %v1124_v0, %v195_v11  ;;  %v328_v11 = vsel %vm326_vm4, %v1250_v53, %v1253_v55 }
 0x106   :  { %v1319_v27 = vsub.f32 %v1126_v1, %v244_v12  ;;  %v536_v12 = vld [vmem:[#allocation2 + $0x90] sm:$0xff] }
 0x108   :  { %vm390_vm12 = vcmp.le.f32.partialorder %v1316_v25, %v1319_v27 }
 0x109   :  { %v391_v42 = vsel %vm390_vm12, %v1316_v25, %v1319_v27 }
 0x10c   :  { %v197_v18 = vpop.f32.mrf.mxu0 }
 0x10d   :  { %v246_v19 = vpop.f32.mrf.mxu1  ;;  %v1322_v28 = vsub.f32 %v1124_v0, %v197_v18  ;;  %v336_v18 = vsel %vm334_vm5, %v1250_v53, %v1253_v55 }
 0x10e   :  { %v1325_v30 = vsub.f32 %v1126_v1, %v246_v19  ;;  %v535_v19 = vld [vmem:[#allocation2 + $0x88] sm:$0xff] }
 0x110   :  { %vm398_vm13 = vcmp.le.f32.partialorder %v1322_v28, %v1325_v30 }
 0x111   :  { %v399_v43 = vsel %vm398_vm13, %v1322_v28, %v1325_v30 }
 0x114   :  { %v200_v36 = vpop.f32.mrf.mxu0 }
 0x115   :  { %v249_v24 = vpop.f32.mrf.mxu1  ;;  %v1369_v26 = vsub.f32 %v1124_v0, %v200_v36  ;;  %v725_v36 = vadd.s32 4294967232, %v1250_v53 }
 0x116   :  { %v1372_v32 = vsub.f32 %v1126_v1, %v249_v24  ;;  %v721_v24 = vadd.s32 4294967240, %v1250_v53 }
 0x118   :  { %vm406_vm14 = vcmp.le.f32.partialorder %v1369_v26, %v1372_v32 }
 0x119   :  { %v407_v9 = vsel %vm406_vm14, %v1369_v26, %v1372_v32 }
 0x11c   :  { %v202_v39 = vpop.f32.mrf.mxu0 }
 0x11d   :  { %v298_v52 = vpop.xlane.xlu0 %297  ;;  %v1394_v45 = vsub.f32 %v1124_v0, %v202_v39 }
 0x11e   :  { %915 = vset.pattern.permute.xlu0 %v298_v52  ;;  %v544_v52 = vld [vmem:[#allocation2 + $0xd0] sm:$0xff] }
 0x11f   :  { %620 = vmatpush.msra.mxu3 %v544_v52 }
 0x121   :  { %621 = vmatpush.msra.mxu3 %v543_v56 }
 0x125   :  { %v306_v57 = vpop.xlane.xlu1 %305 }
 0x126   :  { %916 = vset.pattern.permute.xlu1 %v306_v57  ;;  %300 = vperm.xlu0 %915, %v296_v58   ;;  %v526_v57 = vld [vmem:[#allocation2 + $0x40] sm:$0xff] }
 0x127   :  { %v542_v58 = vld [vmem:[#allocation2 + $0xc0] sm:$0xff]  ;;  %557 = vmatpush.msra.mxu2 %v526_v57 }
 0x128   :  { %622 = vmatpush.msra.mxu3 %v542_v58 }
 0x129   :  { %558 = vmatpush.msra.mxu2 %v525_v59 }
 0x12a   :  { %623 = vmatpush.msra.mxu3 %v541_v60 }
 0x12d   :  { %v314_v61 = vpop.xlane.xlu2 %313 }
 0x12e   :  { %917 = vset.pattern.permute.xlu2 %v314_v61  ;;  %308 = vperm.xlu1 %916, %v304_v62   ;;  %v524_v61 = vld [vmem:[#allocation2 + $0x30] sm:$0xff] }
 0x12f   :  { %v540_v62 = vld [vmem:[#allocation2 + $0xb0] sm:$0xff]  ;;  %559 = vmatpush.msra.mxu2 %v524_v61 }
 0x130   :  { %624 = vmatpush.msra.mxu3 %v540_v62 }
 0x131   :  { %560 = vmatpush.msra.mxu2 %v523_v63  ;;  %v392_v63 = vsel %vm390_vm12, %v1250_v53, %v1253_v55 }
 0x133   :  { %561 = vmatpush.msra.mxu2 %v522_v4  ;;  %v717_v4 = vadd.s32 4294967248, %v1250_v53 }
 0x135   :  { %v322_v2 = vpop.xlane.xlu2 %321  ;;  %562 = vmatpush.msra.mxu2 %v521_v6 }
 0x136   :  { %316 = vperm.xlu2 %917, %v312_v3   ;;  %918 = vset.pattern.permute.xlu1 %v322_v2  ;;  %v539_v2 = vld [vmem:[#allocation2 + $0xa8] sm:$0xff] }
 0x137   :  { %625 = vmatpush.msra.mxu3 %v539_v2  ;;  %v713_v2 = vadd.s32 4294967256, %v1250_v53 }
 0x139   :  { %626 = vmatpush.msra.mxu3 %v538_v5 }
 0x13d   :  { %v330_v7 = vpop.xlane.xlu1 %329 }
 0x13e   :  { %919 = vset.pattern.permute.xlu0 %v330_v7  ;;  %v537_v7 = vld [vmem:[#allocation2 + $0x98] sm:$0xff] }
 0x13f   :  { %627 = vmatpush.msra.mxu3 %v537_v7 }
 0x141   :  { %628 = vmatpush.msra.mxu3 %v536_v12 }
 0x143   :  { %629 = vmatpush.msra.mxu3 %v535_v19 }
 0x145   :  { %v338_v8 = vpop.xlane.xlu0 %337 }
 0x146   :  { %920 = vset.pattern.permute.xlu2 %v338_v8  ;;  %v520_v8 = vld [vmem:[#allocation2 + $0x10] sm:$0xff] }
 0x147   :  { %563 = vmatpush.msra.mxu2 %v520_v8 }
 0x14d   :  { %v346_v3 = vpop.xlane.xlu1 %345 }
 0x150   :  { %377 = vmin.index.xlane.f32.xlu0 %v375_v13  ;;  %v519_v13 = vld [vmem:[#allocation2 + $0x8] sm:$0xff] }
 0x151   :  { %564 = vmatpush.msra.mxu2 %v519_v13 }
 0x153   :  { %565 = vmatpush.msra.mxu2 %v518_v31 }
 0x158   :  { %369 = vmin.index.xlane.f32.xlu1 %v367_v22  ;;  %385 = vmin.index.xlane.f32.xlu0 %v383_v23  ;;  %v534_v22 = vld [vmem:[#allocation2 + $0x80] sm:$0xff]  ;;  %v354_v23 = vpop.xlane.xlu1 %353 }
 0x159   :  { %630 = vmatpush.msra.mxu3 %v534_v22 }
 0x15f   :  { %361 = vmin.index.xlane.f32.xlu2 %v359_v35  ;;  %v697_v35 = vadd.s32 4294967288, %v1250_v53 }
 0x160   :  { %393 = vmin.index.xlane.f32.xlu0 %v391_v42  ;;  %401 = vmin.index.xlane.f32.xlu1 %v399_v43  ;;  %v251_v43 = vpop.f32.mrf.mxu1 }
 0x161   :  { %v1397_v47 = vsub.f32 %v1126_v1, %v251_v43  ;;  %v376_v1 = vsel %vm374_vm8, %v1250_v53, %v1253_v55  ;;  %vm707_vm8 = vcmask 261312   ;;  %v733_v43 = vadd.s32 4294967216, %v1250_v53 }
 0x163   :  { %vm414_vm6 = vcmp.le.f32.partialorder %v1394_v45, %v1397_v47 }
 0x164   :  { %v415_v48 = vsel %vm414_vm6, %v1394_v45, %v1397_v47 }
 0x174   :  { %332 = vperm.xlu0 %919, %v328_v11   ;;  %v400_v11 = vsel %vm398_vm13, %v1250_v53, %v1253_v55 }
 0x177   :  { %340 = vperm.xlu2 %920, %v336_v18  }
 0x179   :  { %324 = vperm.xlu1 %918, %v320_v29  }
 0x17c   :  { %922 = vset.pattern.permute.xlu0 %v354_v23 }
 0x181   :  { %921 = vset.pattern.permute.xlu1 %v346_v3 }
 0x184   :  { %356 = vperm.xlu0 %922, %v352_v34  }
 0x189   :  { %348 = vperm.xlu1 %921, %v344_v33   ;;  %v729_v33 = vadd.s32 4294967224, %v1250_v53 }
 0x190   :  { %v317_v42 = vpop.permute.xlu2 %316 }
 0x191   :  { %vm426_vm4 = vcmp.eq.s32.totalorder %v1250_v53, %v317_v42  ;;  %vm427_vm5 = vcmp.eq.s32.totalorder %v1253_v55, %v317_v42  ;;  %v702_v58 = vperm.slane %v317_v42, %v701_v15 }
 0x198   :  { %v301_v44 = vpop.permute.xlu0 %300 }
 0x199   :  { %vm422_vm15 = vcmp.eq.s32.totalorder %v1250_v53, %v301_v44  ;;  %vm423_vm0 = vcmp.eq.s32.totalorder %v1253_v55, %v301_v44  ;;  %v696_v40 = vperm.slane %v301_v44, %v1250_v53 }
 0x19a   :  { %863 = vmatmul.msk.f32.vlgmr.msra.gmra.mxu2 %vm422_vm15, %v961_v46  ;;  %879 = vmatmul.msk.f32.vlgmr.msra.gmra.mxu3 %vm423_vm0, %v961_v46 }
 0x1a0   :  { %v309_v37 = vpop.permute.xlu1 %308 }
 0x1a1   :  { %v698_v41 = vperm.slane %v309_v37, %v697_v35  ;;  %vm424_vm2 = vcmp.eq.s32.totalorder %v1250_v53, %v309_v37  ;;  %vm425_vm3 = vcmp.eq.s32.totalorder %v1253_v55, %v309_v37 }
 0x1a2   :  { %864 = vmatmul.msk.f32.gmra.mxu2 %vm424_vm2, %v961_v46  ;;  %880 = vmatmul.msk.f32.gmra.mxu3 %vm425_vm3, %v961_v46  ;;  %vm719_vm2 = vcmask 458112  }
 0x1a3   :  { %v700_v38 = vsel %vm699_vm1, %v698_v41, %v696_v40  ;;  %vm715_vm1 = vcmask 392512  }
 0x1a4   :  { %v704_v17 = vsel %vm703_vm7, %v702_v58, %v700_v38 }
 0x1aa   :  { %865 = vmatmul.msk.f32.gmra.mxu2 %vm426_vm4, %v961_v46  ;;  %881 = vmatmul.msk.f32.gmra.mxu3 %vm427_vm5, %v961_v46 }
 0x1b3   :  { %417 = vmin.index.xlane.f32.xlu1 %v415_v48  ;;  %v737_v48 = vadd.s32 4294967208, %v1250_v53 }
 0x1c3   :  { %v378_v49 = vpop.xlane.xlu0 %377 }
 0x1c4   :  { %925 = vset.pattern.permute.xlu1 %v378_v49 }
 0x1cb   :  { %v370_v0 = vpop.xlane.xlu1 %369  ;;  %v386_v52 = vpop.xlane.xlu0 %385 }
 0x1cc   :  { %924 = vset.pattern.permute.xlu0 %v370_v0  ;;  %380 = vperm.xlu1 %925, %v376_v1  }
 0x1d2   :  { %v362_v50 = vpop.xlane.xlu2 %361 }
 0x1d3   :  { %923 = vset.pattern.permute.xlu2 %v362_v50  ;;  %v394_v10 = vpop.xlane.xlu0 %393  ;;  %v402_v56 = vpop.xlane.xlu1 %401 }
 0x1d4   :  { %372 = vperm.xlu0 %924, %v368_v51  }
 0x1da   :  { %v341_v3 = vpop.permute.xlu2 %340 }
 0x1db   :  { %364 = vperm.xlu2 %923, %v360_v54   ;;  %v714_v5 = vperm.slane %v341_v3, %v713_v2  ;;  %vm432_vm12 = vcmp.eq.s32.totalorder %v1250_v53, %v341_v3  ;;  %vm433_vm3 = vcmp.eq.s32.totalorder %v1253_v55, %v341_v3 }
 0x1dc   :  { %926 = vset.pattern.permute.xlu0 %v386_v52  ;;  %v741_v52 = vadd.s32 4294967200, %v1250_v53 }
 0x1e3   :  { %928 = vset.pattern.permute.xlu2 %v402_v56 }
 0x1e4   :  { %388 = vperm.xlu0 %926, %v384_v14  }
 0x1e6   :  { %v333_v57 = vpop.permute.xlu0 %332 }
 0x1e7   :  { %v710_v16 = vperm.slane %v333_v57, %v709_v21  ;;  %vm430_vm15 = vcmp.eq.s32.totalorder %v1250_v53, %v333_v57  ;;  %vm431_vm0 = vcmp.eq.s32.totalorder %v1253_v55, %v333_v57 }
 0x1eb   :  { %v325_v59 = vpop.permute.xlu1 %324 }
 0x1ec   :  { %v706_v60 = vperm.slane %v325_v59, %v705_v20  ;;  %927 = vset.pattern.permute.xlu0 %v394_v10  ;;  %vm428_vm11 = vcmp.eq.s32.totalorder %v1250_v53, %v325_v59  ;;  %vm429_vm10 = vcmp.eq.s32.totalorder %v1253_v55, %v325_v59  ;;  %v745_v59 = vadd.s32 4294967192, %v1250_v53 }
 0x1ed   :  { %866 = vmatmul.msk.f32.gmra.mxu2 %vm428_vm11, %v961_v46  ;;  %882 = vmatmul.msk.f32.gmra.mxu3 %vm429_vm10, %v961_v46  ;;  %vm723_vm11 = vcmask 523712   ;;  %vm727_vm10 = vcmask 589312  }
 0x1ee   :  { %v708_v61 = vsel %vm707_vm8, %v706_v60, %v704_v17 }
 0x1ef   :  { %v712_v62 = vsel %vm711_vm9, %v710_v16, %v708_v61  ;;  %v408_v16 = vsel %vm406_vm14, %v1250_v53, %v1253_v55 }
 0x1f0   :  { %v716_v27 = vsel %vm715_vm1, %v714_v5, %v712_v62 }
 0x1f4   :  { %396 = vperm.xlu0 %927, %v392_v63  }
 0x1f5   :  { %867 = vmatmul.msk.f32.gmra.mxu2 %vm430_vm15, %v961_v46  ;;  %883 = vmatmul.msk.f32.gmra.mxu3 %vm431_vm0, %v961_v46  ;;  %vm731_vm15 = vcmask 654912  }
 0x1f6   :  { %v357_v8 = vpop.permute.xlu0 %356 }
 0x1f7   :  { %vm436_vm7 = vcmp.eq.s32.totalorder %v1250_v53, %v357_v8  ;;  %vm437_vm8 = vcmp.eq.s32.totalorder %v1253_v55, %v357_v8  ;;  %v722_v35 = vperm.slane %v357_v8, %v721_v24 }
 0x1fb   :  { %v349_v6 = vpop.permute.xlu1 %348 }
 0x1fc   :  { %v718_v25 = vperm.slane %v349_v6, %v717_v4  ;;  %vm434_vm4 = vcmp.eq.s32.totalorder %v1250_v53, %v349_v6  ;;  %vm435_vm5 = vcmp.eq.s32.totalorder %v1253_v55, %v349_v6  ;;  %v416_v4 = vsel %vm414_vm6, %v1250_v53, %v1253_v55 }
 0x1fd   :  { %868 = vmatmul.msk.f32.gmra.mxu2 %vm432_vm12, %v961_v46  ;;  %884 = vmatmul.msk.f32.gmra.mxu3 %vm433_vm3, %v961_v46  ;;  %vm735_vm3 = vcmask 720512  }
 0x1fe   :  { %v720_v7 = vsel %vm719_vm2, %v718_v25, %v716_v27 }
 0x1ff   :  { %v724_v40 = vsel %vm723_vm11, %v722_v35, %v720_v7  ;;  %vm747_vm11 = vcmask 917312  }
 0x204   :  { %409 = vmin.index.xlane.f32.xlu2 %v407_v9 }
 0x205   :  { %869 = vmatmul.msk.f32.gmra.mxu2 %vm434_vm4, %v961_v46  ;;  %885 = vmatmul.msk.f32.gmra.mxu3 %vm435_vm5, %v961_v46  ;;  %vm739_vm4 = vcmask 786112  }
 0x20d   :  { %870 = vmatmul.msk.f32.gmra.mxu2 %vm436_vm7, %v961_v46  ;;  %886 = vmatmul.msk.f32.gmra.mxu3 %vm437_vm8, %v961_v46  ;;  %vm743_vm8 = vcmask 851712  }
 0x21c   :  { %404 = vperm.xlu2 %928, %v400_v11  }
 0x21d   :  { %v567_v12 = vpop.f32.mrf.mxu2  ;;  %v632_v13 = vpop.f32.mrf.mxu3 }
 0x21e   :  { %v633_v18 = vadd.f32 %v632_v13, %v567_v12 }
 0x220   :  { %680 = vst [vmem:[%s1578_s4] sm:$0xff] %v633_v18 }
 0x225   :  { %v570_v19 = vpop.f32.mrf.mxu2  ;;  %v635_v29 = vpop.f32.mrf.mxu3 }
 0x226   :  { %v636_v31 = vadd.f32 %v635_v29, %v570_v19  ;;  %v1471_v22 = vpop.xlane.xlu1 %417 }
 0x227   :  { %931 = vset.pattern.permute.xlu0 %v1471_v22 }
 0x228   :  { %681 = vst [vmem:[%s1578_s4 + $0x8] sm:$0xff] %v636_v31 }
 0x22d   :  { %v573_v28 = vpop.f32.mrf.mxu2  ;;  %v638_v30 = vpop.f32.mrf.mxu3 }
 0x22e   :  { %v639_v23 = vadd.f32 %v638_v30, %v573_v28 }
 0x230   :  { %682 = vst [vmem:[%s1578_s4 + $0x10] sm:$0xff] %v639_v23 }
 0x235   :  { %v365_v34 = vpop.permute.xlu2 %364 }
 0x236   :  { %vm438_vm13 = vcmp.eq.s32.totalorder %v1250_v53, %v365_v34  ;;  %vm439_vm9 = vcmp.eq.s32.totalorder %v1253_v55, %v365_v34  ;;  %v726_v44 = vperm.slane %v365_v34, %v725_v36  ;;  %v749_v34 = vadd.s32 4294967184, %v1250_v53 }
 0x237   :  { %871 = vmatmul.msk.f32.gmra.mxu2 %vm438_vm13, %v961_v46  ;;  %887 = vmatmul.msk.f32.gmra.mxu3 %vm439_vm9, %v961_v46  ;;  %v753_v36 = vadd.s32 4294967176, %v1250_v53 }
 0x238   :  { %v728_v38 = vsel %vm727_vm10, %v726_v44, %v724_v40 }
 0x23e   :  { %v381_v42 = vpop.permute.xlu1 %380 }
 0x23f   :  { %vm442_vm2 = vcmp.eq.s32.totalorder %v1250_v53, %v381_v42  ;;  %vm443_vm12 = vcmp.eq.s32.totalorder %v1253_v55, %v381_v42  ;;  %v734_v49 = vperm.slane %v381_v42, %v733_v43 }
 0x246   :  { %v373_v37 = vpop.permute.xlu0 %372 }
 0x247   :  { %v730_v41 = vperm.slane %v373_v37, %v729_v33  ;;  %vm440_vm0 = vcmp.eq.s32.totalorder %v1250_v53, %v373_v37  ;;  %vm441_vm1 = vcmp.eq.s32.totalorder %v1253_v55, %v373_v37 }
 0x248   :  { %872 = vmatmul.msk.f32.gmra.mxu2 %vm440_vm0, %v961_v46  ;;  %888 = vmatmul.msk.f32.gmra.mxu3 %vm441_vm1, %v961_v46  ;;  %vm751_vm0 = vcmask 982912   ;;  %vm755_vm1 = vcmask 1048512  }
 0x249   :  { %v732_v39 = vsel %vm731_vm15, %v730_v41, %v728_v38 }
 0x24a   :  { %v736_v50 = vsel %vm735_vm3, %v734_v49, %v732_v39 }
 0x250   :  { %873 = vmatmul.msk.f32.gmra.mxu2 %vm442_vm2, %v961_v46  ;;  %889 = vmatmul.msk.f32.gmra.mxu3 %vm443_vm12, %v961_v46 }
 0x256   :  { %v389_v0 = vpop.permute.xlu0 %388 }
 0x257   :  { %v738_v1 = vperm.slane %v389_v0, %v737_v48  ;;  %vm444_vm5 = vcmp.eq.s32.totalorder %v1250_v53, %v389_v0  ;;  %vm445_vm7 = vcmp.eq.s32.totalorder %v1253_v55, %v389_v0 }
 0x258   :  { %874 = vmatmul.msk.f32.gmra.mxu2 %vm444_vm5, %v961_v46  ;;  %890 = vmatmul.msk.f32.gmra.mxu3 %vm445_vm7, %v961_v46 }
 0x259   :  { %v740_v51 = vsel %vm739_vm4, %v738_v1, %v736_v50 }
 0x266   :  { %v397_v54 = vpop.permute.xlu0 %396 }
 0x267   :  { %v742_v9 = vperm.slane %v397_v54, %v741_v52  ;;  %vm446_vm13 = vcmp.eq.s32.totalorder %v1250_v53, %v397_v54  ;;  %vm447_vm9 = vcmp.eq.s32.totalorder %v1253_v55, %v397_v54 }
 0x268   :  { %875 = vmatmul.msk.f32.gmra.mxu2 %vm446_vm13, %v961_v46  ;;  %891 = vmatmul.msk.f32.gmra.mxu3 %vm447_vm9, %v961_v46 }
 0x269   :  { %v744_v10 = vsel %vm743_vm8, %v742_v9, %v740_v51 }
 0x270   :  { %v576_v56 = vpop.f32.mrf.mxu2  ;;  %v641_v14 = vpop.f32.mrf.mxu3 }
 0x271   :  { %v642_v15 = vadd.f32 %v641_v14, %v576_v56 }
 0x273   :  { %683 = vst [vmem:[%s1578_s4 + $0x18] sm:$0xff] %v642_v15 }
 0x277   :  { %v410_v20 = vpop.xlane.xlu2 %409 }
 0x278   :  { %v579_v21 = vpop.f32.mrf.mxu2  ;;  %v644_v57 = vpop.f32.mrf.mxu3  ;;  %929 = vset.pattern.permute.xlu1 %v410_v20 }
 0x279   :  { %v645_v58 = vadd.f32 %v644_v57, %v579_v21 }
 0x27b   :  { %684 = vst [vmem:[%s1578_s4 + $0x20] sm:$0xff] %v645_v58 }
 0x27f   :  { %v405_v60 = vpop.permute.xlu2 %404 }
 0x280   :  { %v746_v17 = vperm.slane %v405_v60, %v745_v59  ;;  %v582_v61 = vpop.f32.mrf.mxu2  ;;  %v647_v62 = vpop.f32.mrf.mxu3  ;;  %412 = vperm.xlu1 %929, %v408_v16   ;;  %vm448_vm10 = vcmp.eq.s32.totalorder %v1250_v53, %v405_v60  ;;  %vm449_vm15 = vcmp.eq.s32.totalorder %v1253_v55, %v405_v60 }
 0x281   :  { %v648_v63 = vadd.f32 %v647_v62, %v582_v61  ;;  %876 = vmatmul.msk.f32.gmra.mxu2 %vm448_vm10, %v961_v46  ;;  %892 = vmatmul.msk.f32.gmra.mxu3 %vm449_vm15, %v961_v46 }
 0x282   :  { %v748_v2 = vsel %vm747_vm11, %v746_v17, %v744_v10 }
 0x283   :  { %685 = vst [vmem:[%s1578_s4 + $0x28] sm:$0xff] %v648_v63 }
 0x288   :  { %v585_v26 = vpop.f32.mrf.mxu2  ;;  %v650_v32 = vpop.f32.mrf.mxu3  ;;  %930 = vset.pattern.permute.xlu1 %v1471_v22 }
 0x289   :  { %v651_v3 = vadd.f32 %v650_v32, %v585_v26 }
 0x28b   :  { %686 = vst [vmem:[%s1578_s4 + $0x30] sm:$0xff] %v651_v3 }
 0x290   :  { %v588_v5 = vpop.f32.mrf.mxu2  ;;  %v653_v6 = vpop.f32.mrf.mxu3  ;;  %420 = vperm.xlu1 %930, %v416_v4  }
 0x291   :  { %v654_v25 = vadd.f32 %v653_v6, %v588_v5 }
 0x293   :  { %687 = vst [vmem:[%s1578_s4 + $0x38] sm:$0xff] %v654_v25 }
 0x2ba   :  { %v591_v27 = vpop.f32.mrf.mxu2  ;;  %v656_v7 = vpop.f32.mrf.mxu3 }
 0x2bb   :  { %v657_v8 = vadd.f32 %v656_v7, %v591_v27 }
 0x2bd   :  { %688 = vst [vmem:[%s1578_s4 + $0x40] sm:$0xff] %v657_v8 }
 0x2cb   :  { %v594_v11 = vpop.f32.mrf.mxu2  ;;  %v659_v12 = vpop.f32.mrf.mxu3 }
 0x2cc   :  { %v660_v13 = vadd.f32 %v659_v12, %v594_v11 }
 0x2ce   :  { %689 = vst [vmem:[%s1578_s4 + $0x48] sm:$0xff] %v660_v13 }
 0x2d3   :  { %v597_v45 = vpop.f32.mrf.mxu2  ;;  %v662_v47 = vpop.f32.mrf.mxu3 }
 0x2d4   :  { %v663_v18 = vadd.f32 %v662_v47, %v597_v45 }
 0x2d6   :  { %690 = vst [vmem:[%s1578_s4 + $0x50] sm:$0xff] %v663_v18 }
 0x2db   :  { %v600_v19 = vpop.f32.mrf.mxu2  ;;  %v665_v29 = vpop.f32.mrf.mxu3 }
 0x2dc   :  { %v666_v31 = vadd.f32 %v665_v29, %v600_v19 }
 0x2de   :  { %691 = vst [vmem:[%s1578_s4 + $0x58] sm:$0xff] %v666_v31 }
 0x2eb   :  { %v603_v22 = vpop.f32.mrf.mxu2  ;;  %v668_v28 = vpop.f32.mrf.mxu3 }
 0x2ec   :  { %v669_v30 = vadd.f32 %v668_v28, %v603_v22 }
 0x2ee   :  { %692 = vst [vmem:[%s1578_s4 + $0x60] sm:$0xff] %v669_v30 }
 0x2f2   :  { %v413_v23 = vpop.permute.xlu1 %412 }
 0x2f3   :  { %vm450_vm14 = vcmp.eq.s32.totalorder %v1250_v53, %v413_v23  ;;  %vm451_vm6 = vcmp.eq.s32.totalorder %v1253_v55, %v413_v23  ;;  %v750_v24 = vperm.slane %v413_v23, %v749_v34 }
 0x2f4   :  { %877 = vmatmul.msk.f32.gmra.mxu2 %vm450_vm14, %v961_v46  ;;  %893 = vmatmul.msk.f32.gmra.mxu3 %vm451_vm6, %v961_v46 }
 0x2f5   :  { %v752_v35 = vsel %vm751_vm0, %v750_v24, %v748_v2 }
 0x302   :  { %v421_v33 = vpop.permute.xlu1 %420 }
 0x303   :  { %v754_v44 = vperm.slane %v421_v33, %v753_v36  ;;  %vm452_vm2 = vcmp.eq.s32.totalorder %v1250_v53, %v421_v33  ;;  %vm453_vm12 = vcmp.eq.s32.totalorder %v1253_v55, %v421_v33 }
 0x304   :  { %v606_v37 = vpop.f32.mrf.mxu2  ;;  %878 = vmatmul.msk.f32.gmra.mxu2 %vm452_vm2, %v961_v46  ;;  %v671_v40 = vpop.f32.mrf.mxu3  ;;  %894 = vmatmul.msk.f32.gmra.mxu3 %vm453_vm12, %v961_v46 }
 0x305   :  { %v756_v41 = vsel %vm755_vm1, %v754_v44, %v752_v35  ;;  %v672_v38 = vadd.f32 %v671_v40, %v606_v37 }
 0x306   :  { %757 = vst [vmem:[%s1579_s5] sm:$0x1] %v756_v41 }
 0x307   :  { %693 = vst [vmem:[%s1578_s4 + $0x68] sm:$0xff] %v672_v38 }
 0x377   :  { %v609_v53 = vpop.f32.mrf.mxu2  ;;  %v674_v39 = vpop.f32.mrf.mxu3 }
 0x378   :  { %v675_v55 = vadd.f32 %v674_v39, %v609_v53 }
 0x37a   :  { %694 = vst [vmem:[%s1578_s4 + $0x70] sm:$0xff] %v675_v55 }
 0x387   :  { %v612_v42 = vpop.f32.mrf.mxu2  ;;  %v677_v43 = vpop.f32.mrf.mxu3 }
 0x388   :  { %v678_v46 = vadd.f32 %v677_v43, %v612_v42 }
 0x38a   :  { %695 = vst [vmem:[%s1578_s4 + $0x78] sm:$0xff] %v678_v46 }
 0x38b   :  { %766 = vsyncpa [#allocation3], 1 }

</bundles_post_ra>
